<compile_context>
chip_gen: v7x
topology: tpu7x:2x2x1
jax: 0.10.0
libtpu: 0.0.40
codegen_flags: <defaults>
</compile_context>

<pallas_src>
import numpy as np
import jax
import jax.numpy as jnp
from jax import lax
from jax.experimental import pallas as pl
from jax.experimental.pallas import tpu as pltpu


def _pair(v):
    if isinstance(v, (tuple, list)):
        return int(v[0]), int(v[1])
    return int(v), int(v)


def _out_dim(inp, k, s, p, ceil_mode):
    if ceil_mode:
        o = -(-(inp + 2 * p - k) // s) + 1
        if (o - 1) * s >= inp + p:
            o -= 1
    else:
        o = (inp + 2 * p - k) // s + 1
    return int(o)


def _pool_matrix(inp, out, k, s, p, count_include_pad):
    """0/1 window-selection matrix with the ATen divisor folded into each row."""
    m = np.zeros((out, inp), np.float64)
    for o in range(out):
        start = o * s - p
        end = start + k
        i0, i1 = max(start, 0), min(end, inp)
        if count_include_pad:
            cnt = min(end, inp + p) - start          # window clipped to padded region
        else:
            cnt = max(i1 - i0, 1)                    # window clipped to real input
        m[o, i0:i1] = 1.0 / cnt
    return m


def _vmem_budget():
    """Generation-aware VMEM numbers (v7x: 64 MiB/TC, v5e/v6e: 128 MiB)."""
    try:
        cap = int(pltpu.get_tpu_info().vmem_capacity_bytes)
    except Exception:
        cap = 64 * 1024 * 1024                       # conservative (v7x) fallback
    limit = min(cap * 3 // 4, 96 * 1024 * 1024)      # 48 MiB on v7x, 96 MiB on v5e/v6e
    budget = limit * 5 // 8                          # headroom for compiler scratch
    return int(budget), int(limit)


def _divisors(n):
    ds = set()
    i = 1
    while i * i <= n:
        if n % i == 0:
            ds.add(i)
            ds.add(n // i)
        i += 1
    return ds


def _choose_B(nc, per_row_bytes, const_bytes, budget, require_mult8):
    """Planes per grid step: as large as the VMEM budget allows, a divisor of
    NC (no pad copy), and >= ~8 grid steps when there is enough work so both
    megacore TensorCores get several pipelined steps each."""
    avail = max(budget - const_bytes, per_row_bytes)
    b_max = max(1, int(avail // max(per_row_bytes, 1)))
    if nc >= 64:
        b_max = min(b_max, max(8, -(-nc // 8)))
    if nc <= b_max:
        return nc                                    # full-extent block, one step
    if require_mult8:
        cands = [d for d in _divisors(nc) if d % 8 == 0 and d <= b_max]
        if cands:
            return max(cands)
        return max(8, (b_max // 8) * 8)              # rare: wrapper pads NC
    cands = [d for d in _divisors(nc) if d <= b_max]
    return max(cands) if cands else 1


# --------------------------------------------------------------------------
# Kernels
# --------------------------------------------------------------------------

def _avg_pool_dense_kernel(m_ref, x_ref, o_ref):
    """Small-plane fast path: one MXU matmul per block.

    m_ref: (H*W, H_out*W_out) f32 pooling matrix (ATen divisor folded in).
    x_ref: (B, H*W)           lane-dense input planes.
    o_ref: (B, H_out*W_out)   lane-dense output planes.
    """
    o_ref[...] = jnp.dot(x_ref[...], m_ref[...],
                         preferred_element_type=jnp.float32).astype(o_ref.dtype)


def _avg_pool_sep_kernel(ph_ref, pwt_ref, x_ref, o_ref):
    """Separable path for large planes:  out = P_h @ X @ P_w^T.

    ph_ref:  (H_out, H)  f32 row-pool matrix (divisor folded).
    pwt_ref: (W, W_out)  f32 column-pool matrix, transposed (divisor folded).
    x_ref:   (B, H, W)
    o_ref:   (B, H_out, W_out)
    """
    b, h, w = x_ref.shape
    h_out = ph_ref.shape[0]
    w_out = pwt_ref.shape[1]

    x = x_ref[...].astype(jnp.float32)
    # P_h broadcast in-register (NOT materialized B-wide in HBM).
    phb = jnp.broadcast_to(ph_ref[...], (b, h_out, h))

    # Row pool: batched over the B planes, f32 accumulation.
    # TODO(synk): collapse into one (H_out, H) @ (H, B*W_out) matmul via an XLU
    # transpose and pad H_out to a multiple of 8 so the reshapes are no-ops.
    t = lax.dot_general(phb, x,
                        dimension_numbers=(((2,), (1,)), ((0,), (0,))),
                        preferred_element_type=jnp.float32)          # (B, H_out, W)

    # Column pool collapsed into ONE matmul: (B*H_out, W) @ (W, W_out).
    y = jnp.dot(t.reshape(b * h_out, w), pwt_ref[...],
                preferred_element_type=jnp.float32)                  # (B*H_out, W_out)

    o_ref[...] = y.reshape(b, h_out, w_out).astype(o_ref.dtype)


# --------------------------------------------------------------------------
# Wrapper
# --------------------------------------------------------------------------

def avg_pool2d_pallas(x, kernel_size, stride=None, padding=0,
                      ceil_mode=False, count_include_pad=True):
    """Matches torch.nn.functional.avg_pool2d semantics for NCHW input."""
    kh, kw = _pair(kernel_size)
    sh, sw = _pair(stride if stride is not None else kernel_size)
    ph_pad, pw_pad = _pair(padding)

    orig_dtype = x.dtype
    if x.dtype not in (jnp.float32, jnp.bfloat16):
        x = x.astype(jnp.float32)              # bf16 stays bf16 (MXU-native feed)
    out_dtype = x.dtype

    N, C, H, W = x.shape
    H_out = _out_dim(H, kh, sh, ph_pad, ceil_mode)
    W_out = _out_dim(W, kw, sw, pw_pad, ceil_mode)

    # Separable divisor folded straight into the pooling matrices (f32).
    Mh = _pool_matrix(H, H_out, kh, sh, ph_pad, count_include_pad)   # (H_out, H)
    Mw = _pool_matrix(W, W_out, kw, sw, pw_pad, count_include_pad)   # (W_out, W)

    NC = N * C
    HW = H * W
    HWo = H_out * W_out
    in_it = jnp.dtype(x.dtype).itemsize
    out_it = jnp.dtype(out_dtype).itemsize
    budget, vmem_limit = _vmem_budget()

    cparams = pltpu.CompilerParams(
        dimension_semantics=("parallel",),
        vmem_limit_bytes=vmem_limit)

    use_dense = (HW <= 4096) and (HW * HWo * 4 <= 4 * 1024 * 1024)

    if use_dense:
        # ---- Fast path: one dense pooling matrix, lane-dense in/out blocks.
        m = jnp.asarray(np.kron(Mh, Mw).T, jnp.float32)              # (HW, HWo)
        per_row = 2 * HW * in_it + 2 * HWo * out_it + 4 * HWo
        const_bytes = 2 * HW * HWo * 4          # grid-constant but double-buffered
        B = _choose_B(NC, per_row, const_bytes, budget, require_mult8=True)

        x_flat = x.reshape(NC, HW)              # contiguous -> free reshape
        NC_pad = -(-NC // B) * B
        if NC_pad != NC:
            # TODO(synk): handle the ragged tail with a masked last block instead
            # of this pad copy (only hit when NC has no suitable divisor).
            x_flat = jnp.pad(x_flat, ((0, NC_pad - NC), (0, 0)))

        out_flat = pl.pallas_call(
            _avg_pool_dense_kernel,
            out_shape=jax.ShapeDtypeStruct((NC_pad, HWo), out_dtype),
            grid_spec=pltpu.PrefetchScalarGridSpec(
                num_scalar_prefetch=0,
                grid=(NC_pad // B,),
                in_specs=[
                    pl.BlockSpec((HW, HWo), lambda i: (0, 0)),       # grid-constant
                    pl.BlockSpec((B, HW), lambda i: (i, 0)),
                ],
                out_specs=pl.BlockSpec((B, HWo), lambda i: (i, 0)),
            ),
            compiler_params=cparams,
        )(m, x_flat)

        if NC_pad != NC:
            out_flat = out_flat[:NC]
        out = out_flat.reshape(N, C, H_out, W_out)
    else:
        # ---- Separable path for large planes.
        ph = jnp.asarray(Mh, jnp.float32)                            # (H_out, H)
        pwt = jnp.asarray(Mw.T, jnp.float32)                         # (W, W_out)
        per_row = (2 * H * W * in_it + 2 * H_out * W_out * out_it
                   + 4 * (H_out * H + H_out * W + H * W + 2 * H_out * W_out))
        const_bytes = 2 * 4 * (H_out * H + W * W_out)
        B = _choose_B(NC, per_row, const_bytes, budget, require_mult8=False)

        x_flat = x.reshape(NC, H, W)
        NC_pad = -(-NC // B) * B
        if NC_pad != NC:
            x_flat = jnp.pad(x_flat, ((0, NC_pad - NC), (0, 0), (0, 0)))

        out_flat = pl.pallas_call(
            _avg_pool_sep_kernel,
            out_shape=jax.ShapeDtypeStruct((NC_pad, H_out, W_out), out_dtype),
            grid_spec=pltpu.PrefetchScalarGridSpec(
                num_scalar_prefetch=0,
                grid=(NC_pad // B,),
                in_specs=[
                    pl.BlockSpec((H_out, H), lambda i: (0, 0)),      # grid-constant
                    pl.BlockSpec((W, W_out), lambda i: (0, 0)),      # grid-constant
                    pl.BlockSpec((B, H, W), lambda i: (i, 0, 0)),
                ],
                out_specs=pl.BlockSpec((B, H_out, W_out), lambda i: (i, 0, 0)),
            ),
            compiler_params=cparams,
        )(ph, pwt, x_flat)

        if NC_pad != NC:
            out_flat = out_flat[:NC]
        out = out_flat.reshape(N, C, H_out, W_out)

    if out.dtype != orig_dtype:
        out = out.astype(orig_dtype)
    return out


class AvgPool2d:
    """Mirror of torch.nn.AvgPool2d (forward only) backed by the Pallas kernel."""

    def __init__(self, kernel_size, stride=None, padding=0,
                 ceil_mode=False, count_include_pad=True):
        self.kernel_size = kernel_size
        self.stride = stride or kernel_size
        self.padding = padding
        self.ceil_mode = ceil_mode
        self.count_include_pad = count_include_pad
        # TODO(synk): LRP / get_grad_and_activation relevance-propagation helpers
        # (F.interpolate based, backward-style) are not part of the forward pass
        # and are not implemented as Pallas kernels here.

    def __call__(self, x):
        self.input = x
        self.output = avg_pool2d_pallas(
            x, self.kernel_size, self.stride, self.padding,
            self.ceil_mode, self.count_include_pad)
        return self.output


def _ref_avg_pool2d(x, kernel_size, stride=None, padding=0,
                    ceil_mode=False, count_include_pad=True):
    """Plain numpy reference mirroring ATen's avg_pool2d."""
    kh, kw = _pair(kernel_size)
    sh, sw = _pair(stride if stride is not None else kernel_size)
    ph, pw = _pair(padding)
    xn = np.asarray(x, np.float64)
    N, C, H, W = xn.shape
    Ho = _out_dim(H, kh, sh, ph, ceil_mode)
    Wo = _out_dim(W, kw, sw, pw, ceil_mode)
    out = np.zeros((N, C, Ho, Wo), np.float64)
    for oh in range(Ho):
        hs = oh * sh - ph
        he = hs + kh
        h0, h1 = max(hs, 0), min(he, H)
        for ow in range(Wo):
            ws = ow * sw - pw
            we = ws + kw
            w0, w1 = max(ws, 0), min(we, W)
            s = xn[:, :, h0:h1, w0:w1].sum(axis=(2, 3))
            if count_include_pad:
                d = (min(he, H + ph) - hs) * (min(we, W + pw) - ws)
            else:
                d = max(h1 - h0, 1) * max(w1 - w0, 1)
            out[:, :, oh, ow] = s / d
    return out


if __name__ == "__main__":
    key = jax.random.PRNGKey(0)
    k1, k2 = jax.random.split(key)

    # Case 1: default AvgPool2d(kernel_size=2) (stride = kernel_size).
    x = jax.random.normal(k1, (2, 4, 16, 16), dtype=jnp.float32)
    m = AvgPool2d(kernel_size=2)
    out = jax.block_until_ready(m(x))
    assert out.shape == (2, 4, 8, 8), out.shape
    np.testing.assert_allclose(np.asarray(out), _ref_avg_pool2d(x, 2),
                               rtol=1e-5, atol=1e-5)

    # Case 2: padding + ceil_mode + count_include_pad=False, odd spatial sizes.
    x2 = jax.random.normal(k2, (2, 3, 15, 17), dtype=jnp.float32)
    m2 = AvgPool2d(kernel_size=3, stride=2, padding=1,
                   ceil_mode=True, count_include_pad=False)
    out2 = jax.block_until_ready(m2(x2))
    ref2 = _ref_avg_pool2d(x2, 3, stride=2, padding=1,
                           ceil_mode=True, count_include_pad=False)
    assert out2.shape == ref2.shape, (out2.shape, ref2.shape)
    np.testing.assert_allclose(np.asarray(out2), ref2, rtol=1e-4, atol=1e-4)

    print("KERNEL_OK")
</pallas_src>

<mosaic_0001>
module attributes {stable_mosaic.version = 11 : i64} {
  func.func @_avg_pool_dense_kernel(%arg0: i32, %arg1: memref<256x64xf32, #tpu.memory_space<vmem>>, %arg2: memref<8x256xf32, #tpu.memory_space<vmem>>, %arg3: memref<8x64xf32, #tpu.memory_space<vmem>>) attributes {dimension_semantics = [#tpu.dimension_semantics<parallel>], iteration_bounds = array<i64: 1>, scalar_prefetch = 0 : i64, scratch_operands = 0 : i64, tpu.core_type = #tpu.core_type<tc>, window_params = [{pipeline_mode = #tpu.pipeline_mode<synchronous>, transform_indices = @transform_0, window_bounds = array<i64: 256, 64>}, {transform_indices = @transform_1, window_bounds = array<i64: 8, 256>}, {transform_indices = @transform_2, window_bounds = array<i64: 8, 64>}]} {
    %c0 = arith.constant 0 : index
    %c0_0 = arith.constant 0 : index
    %0 = vector.load %arg2[%c0, %c0_0] : memref<8x256xf32, #tpu.memory_space<vmem>>, vector<8x256xf32>
    %c0_1 = arith.constant 0 : index
    %c0_2 = arith.constant 0 : index
    %1 = vector.load %arg1[%c0_1, %c0_2] : memref<256x64xf32, #tpu.memory_space<vmem>>, vector<256x64xf32>
    %cst = arith.constant dense<0.000000e+00> : vector<8x64xf32>
    %2 = tpu.matmul %0, %1, %cst {dimension_numbers = #tpu.dot_dimension_numbers<[1], [0], [0], [1], [0, 0, 1, 1], [], []>} : vector<8x256xf32>, vector<256x64xf32>, vector<8x64xf32> -> vector<8x64xf32>
    %c0_3 = arith.constant 0 : index
    %c0_4 = arith.constant 0 : index
    %3 = vector.load %arg3[%c0_3, %c0_4] : memref<8x64xf32, #tpu.memory_space<vmem>>, vector<8x64xf32>
    tpu.vector_store %arg3[%c0_3, %c0_4], %2 {strides = array<i32>} : memref<8x64xf32, #tpu.memory_space<vmem>>, vector<8x64xf32>,
    return
  }
  func.func @transform_0(%arg0: i32) -> (i32, i32) {
    %c0_i32 = arith.constant 0 : i32
    %c0_i32_0 = arith.constant 0 : i32
    %c0_i32_1 = arith.constant 0 : i32
    return %c0_i32, %c0_i32_0 : i32, i32
  }
  func.func @transform_1(%arg0: i32) -> (i32, i32) {
    %c0_i32 = arith.constant 0 : i32
    %c0_i32_0 = arith.constant 0 : i32
    return %arg0, %c0_i32 : i32, i32
  }
  func.func @transform_2(%arg0: i32) -> (i32, i32) {
    %c0_i32 = arith.constant 0 : i32
    %c0_i32_0 = arith.constant 0 : i32
    return %arg0, %c0_i32 : i32, i32
  }
}

</mosaic_0001>

<bundles_post_ra>
// kernel: tpu_custom_call.1
= control target key start
LH: loop header
LB: loop body
LE: loop exit
PB: predicated region body
PF: predicated region fallthrough
CT: control target
= control target key end

     0   :  { %s354_s0 = inlined_call_operand.vmem [shape: f32[256,64], index: 0, kind: input, shape index: {}]   ;;  %s355_s1 = inlined_call_operand.vmem [shape: f32[8,256], index: 1, kind: input, shape index: {}]   ;;  %s356_s2 = inlined_call_operand.hbm [shape: f32[8,64], index: 2, kind: output, shape index: {}]  }
   0x1   :  { %v30_v0 = vld [vmem:[%s354_s0 + $0x80] sm:$0xff]  ;;  %v31_v1 = vld [vmem:[%s354_s0 + $0x88] sm:$0xff]  ;;  %v32_v5 = vld [vmem:[%s354_s0 + $0x90] sm:$0xff] }
   0x2   :  { %v14_v2 = vld [vmem:[%s354_s0] sm:$0xff]  ;;  %v167_v3 = vpack.c.bf16 %v31_v1, %v30_v0  ;;  %v15_v4 = vld [vmem:[%s354_s0 + $0x8] sm:$0xff]  ;;  %v33_v6 = vld [vmem:[%s354_s0 + $0x98] sm:$0xff] }
   0x3   :  { %v169_v7 = vpack.c.bf16 %v15_v4, %v14_v2  ;;  %v171_v8 = vpack.c.bf16 %v33_v6, %v32_v5  ;;  %v16_v9 = vld [vmem:[%s354_s0 + $0x10] sm:$0xff]  ;;  %v17_v10 = vld [vmem:[%s354_s0 + $0x18] sm:$0xff]  ;;  %v34_v11 = vld [vmem:[%s354_s0 + $0xa0] sm:$0xff] }
   0x4   :  { %168 = vmatprep.subr.bf16.mxu0 %v167_v3  ;;  %v35_v12 = vld [vmem:[%s354_s0 + $0xa8] sm:$0xff]  ;;  %v173_v13 = vpack.c.bf16 %v17_v10, %v16_v9  ;;  %v18_v15 = vld [vmem:[%s354_s0 + $0x20] sm:$0xff]  ;;  %v36_v17 = vld [vmem:[%s354_s0 + $0xb0] sm:$0xff] }
   0x5   :  { %170 = vmatpush3.bf16.msra.mxu0 %v169_v7  ;;  %v175_v14 = vpack.c.bf16 %v35_v12, %v34_v11  ;;  %v19_v16 = vld [vmem:[%s354_s0 + $0x28] sm:$0xff]  ;;  %v37_v18 = vld [vmem:[%s354_s0 + $0xb8] sm:$0xff]  ;;  %v20_v21 = vld [vmem:[%s354_s0 + $0x30] sm:$0xff] }
   0x6   :  { %172 = vmatprep.subr.bf16.mxu0 %v171_v8  ;;  %v177_v19 = vpack.c.bf16 %v19_v16, %v18_v15  ;;  %v179_v20 = vpack.c.bf16 %v37_v18, %v36_v17  ;;  %v21_v22 = vld [vmem:[%s354_s0 + $0x38] sm:$0xff]  ;;  %v38_v23 = vld [vmem:[%s354_s0 + $0xc0] sm:$0xff]  ;;  %v39_v24 = vld [vmem:[%s354_s0 + $0xc8] sm:$0xff] }
   0x7   :  { %v13_v25 = vld [vmem:[%s355_s1 + $0x8] sm:$0xff] }
   0x8   :  { %110 = vmatprep.mubr.f32.mxu0 %v13_v25 }
   0x9   :  { %174 = vmatpush3.bf16.msra.mxu0 %v173_v13 }
   0xa   :  { %176 = vmatprep.subr.bf16.mxu0 %v175_v14 }
   0xb   :  { %7 = vsyncpa [#allocation3], 0  ;;  %v181_v26 = vpack.c.bf16 %v21_v22, %v20_v21  ;;  %v183_v27 = vpack.c.bf16 %v39_v24, %v38_v23  ;;  %v22_v28 = vld [vmem:[%s354_s0 + $0x40] sm:$0xff]  ;;  %v23_v29 = vld [vmem:[%s354_s0 + $0x48] sm:$0xff]  ;;  %s224_s21 = smov [#allocation2]   ;;  %vm116_vm0 = vcmask 523264  }
   0xc   :  { %v40_v30 = vld [vmem:[%s354_s0 + $0xd0] sm:$0xff]  ;;  %v41_v31 = vld [vmem:[%s354_s0 + $0xd8] sm:$0xff]  ;;  %v185_v32 = vpack.c.bf16 %v23_v29, %v22_v28  ;;  %v42_v36 = vld [vmem:[%s354_s0 + $0xe0] sm:$0xff]  ;;  %s124_s22 = sshll.u32 %s224_s21, 4  ;;  %s125_s22 = int_to_ptr.vmem [resolvable:$true] %s124_s22 }
   0xd   :  { %178 = vmatpush3.bf16.msra.mxu0 %v177_v19  ;;  %v187_v33 = vpack.c.bf16 %v41_v31, %v40_v30  ;;  %v24_v34 = vld [vmem:[%s354_s0 + $0x50] sm:$0xff]  ;;  %v25_v35 = vld [vmem:[%s354_s0 + $0x58] sm:$0xff]  ;;  %v43_v37 = vld [vmem:[%s354_s0 + $0xe8] sm:$0xff]  ;;  %s200_s23 = scalar_lea.vmem %s125_s22, 128  ;;  %p205_p1 = scmp.lt.s32.totalorder %s125_s22, %s125_s22 }
   0xe   :  { %180 = vmatprep.subr.bf16.mxu0 %v179_v20  ;;  %v189_v38 = vpack.c.bf16 %v25_v35, %v24_v34  ;;  %v191_v39 = vpack.c.bf16 %v43_v37, %v42_v36  ;;  %v26_v40 = vld [vmem:[%s354_s0 + $0x60] sm:$0xff]  ;;  %v27_v41 = vld [vmem:[%s354_s0 + $0x68] sm:$0xff]  ;;  %v44_v42 = vld [vmem:[%s354_s0 + $0xf0] sm:$0xff]  ;;  %p201_p0 = scmp.ne.s32.totalorder %s125_s22, %s200_s23  ;;  %p206_p2 = scmp.lt.s32.totalorder %s200_s23, %s200_s23 }
   0xf   :  { %v45_v43 = vld [vmem:[%s354_s0 + $0xf8] sm:$0xff]  ;;  %v193_v44 = vpack.c.bf16 %v27_v41, %v26_v40  ;;  %v28_v46 = vld [vmem:[%s354_s0 + $0x70] sm:$0xff]  ;;  %v12_v49 = vld [vmem:[%s355_s1] sm:$0xff] }
  0x10   :  { %v195_v45 = vpack.c.bf16 %v45_v43, %v44_v42  ;;  %v29_v47 = vld [vmem:[%s354_s0 + $0x78] sm:$0xff]  ;;  %p207_p3 = por %p206_p2, %p205_p1 }
  0x11   :  { %182 = vmatpush3.bf16.msra.mxu0 %v181_v26  ;;  %v197_v48 = vpack.c.bf16 %v29_v47, %v28_v46 }
  0x12   :  { %184 = vmatprep.subr.bf16.mxu0 %v183_v27  ;;  %p208_p4 = pnand %p207_p3, %p201_p0 }
  0x15   :  { %186 = vmatpush3.bf16.msra.mxu0 %v185_v32 }
  0x16   :  { %188 = vmatprep.subr.bf16.mxu0 %v187_v33 }
  0x19   :  { %190 = vmatpush3.bf16.msra.mxu0 %v189_v38 }
  0x1a   :  { %192 = vmatprep.subr.bf16.mxu0 %v191_v39 }
  0x1d   :  { %194 = vmatpush3.bf16.msra.mxu0 %v193_v44 }
  0x1e   :  { %196 = vmatprep.subr.bf16.mxu0 %v195_v45 }
  0x21   :  { %198 = vmatpush3.bf16.msra.mxu0 %v197_v48 }
  0x24   :  { %111 = vmatmul.mubr.f32.vlgmr.msra.gmra.mrb[0].mxu0 %v12_v49 }
  0xf7   :  { %v164_v50 = vpop.f32.mrb[0].mxu0 }
  0xf8   :  { %v165_v51 = vpop.f32.mrb[1].mxu0 }
  0xf9   :  { %v166_v52 = vadd.f32 %v165_v51, %v164_v50 }
  0xfb   :  { %117 = vst.msk [vmem:[#allocation2] sm:$0xff] %vm116_vm0, %v166_v52 }
  0xfc   :  { %211 = shalt.err (!%p208_p4)
}
  0xfd   :  { %s212_s1 = scalar_lea.hbm %s356_s2, 128 }
  0xfe   :  { %p213_p5 = scmp.ne.s32.totalorder %s356_s2, %s212_s1  ;;  %p216_p6 = scmp.lt.u32.totalorder %s212_s1, %s356_s2 }
 0x100   :  { %p218_p7 = pnand %p216_p6, %p213_p5 }
 0x102   :  { %221 = shalt.err (!%p218_p7)
}
 0x103   :  { %127 = dma.vmem_to_hbm [thread:$0]  %s125_s22, 128, %s356_s2, [#allocation3]  }
 0x104   :  { %222 = dma.done.wait [#allocation3], 128  }
 0x105   :  { %223 = vsyncadd [#allocation3], 4294967168 }
 0x106   :  { %131 = vsyncpa [#allocation3], 1 }

</bundles_post_ra>
